<compile_context>
chip_gen: v6e
topology: v6e:2x2x1
jax: 0.10.0
libtpu: 0.0.40
codegen_flags: <defaults>
</compile_context>

<pallas_src>
import jax
import jax.numpy as jnp
from jax.experimental import pallas as pl
from jax.experimental.pallas import tpu as pltpu


def mlp_kernel(x_ref, w1_ref, b1_ref, w2_ref, b2_ref, w3_ref, b3_ref, o_ref):
    # x arrives as f32 straight from HBM; in-VMEM cast to bf16 is free VPU work.
    x = x_ref[...].astype(jnp.bfloat16)
    # fc1 + ReLU  (bf16 x bf16 -> f32 accumulate on MXU)
    h1 = jnp.dot(x, w1_ref[...], preferred_element_type=jnp.float32)
    h1 = jnp.maximum(h1 + b1_ref[...], 0.0).astype(jnp.bfloat16)
    # TODO(synk): training-mode dropout (p=0.19) would use pltpu.prng_seed +
    # pltpu.prng_random_bits; this forward reproduces eval-mode (identity).
    # fc2 + ReLU
    h2 = jnp.dot(h1, w2_ref[...], preferred_element_type=jnp.float32)
    h2 = jnp.maximum(h2 + b2_ref[...], 0.0).astype(jnp.bfloat16)
    # fc3 (logits, no activation)
    o_ref[...] = (
        jnp.dot(h2, w3_ref[...], preferred_element_type=jnp.float32) + b3_ref[...]
    )


def _round_up(n, m):
    return ((n + m - 1) // m) * m


def net_forward(x, params, *, block_rows=4096):
    """x: (B, 85) float32.  Returns (B, 2) float32 logits."""
    w1, b1, w2, b2, w3, b3 = params
    B = x.shape[0]

    # Only the tiny weights are pre-cast to bf16 (one-off ~170 KB, negligible);
    # the batch-sized x stays f32 and is cast inside the kernel.
    w1b = w1.astype(jnp.bfloat16)
    w2b = w2.astype(jnp.bfloat16)
    w3b = w3.astype(jnp.bfloat16)

    # Batch tile: multiple of 8 (sublane rule), capped at block_rows.
    # block_rows=4096 keeps live VMEM (~16 MiB incl. double buffers and the
    # lane-padded output tile) comfortably under v7x's 64 MiB budget.
    TM = max(8, min(block_rows, _round_up(B, 8)))
    grid_b = pl.cdiv(B, TM)
    # Prefer an even multi-tile grid so v7x's two TensorCores split evenly.
    if grid_b > 1 and grid_b % 2 == 1:
        tm_try = max(8, _round_up(pl.cdiv(B, grid_b + 1), 8))
        if pl.cdiv(B, tm_try) % 2 == 0:
            TM = tm_try
            grid_b = pl.cdiv(B, TM)

    const = lambda a: pl.BlockSpec(a.shape, lambda i: (0,) * a.ndim)

    out = pl.pallas_call(
        mlp_kernel,
        out_shape=jax.ShapeDtypeStruct((B, 2), jnp.float32),
        grid=(grid_b,),
        in_specs=[
            pl.BlockSpec((TM, 85), lambda i: (i, 0)),   # x streams through VMEM (f32)
            const(w1b), const(b1),
            const(w2b), const(b2),
            const(w3b), const(b3),
        ],
        out_specs=pl.BlockSpec((TM, 2), lambda i: (i, 0)),
        compiler_params=pltpu.CompilerParams(
            dimension_semantics=("parallel",),
            vmem_limit_bytes=48 * 1024 * 1024,  # big tiles OK on v5e's 16 MiB default
        ),
    )(x, w1b, b1, w2b, b2, w3b, b3)
    return out


def init_params(key):
    """Deterministic init mimicking nn.Linear's U(-1/sqrt(fan_in), 1/sqrt(fan_in))."""
    def linear(key, fan_in, fan_out):
        kw, kb = jax.random.split(key)
        bound = 1.0 / jnp.sqrt(fan_in)
        w = jax.random.uniform(kw, (fan_in, fan_out), jnp.float32, -bound, bound)
        b = jax.random.uniform(kb, (1, fan_out), jnp.float32, -bound, bound)
        return w, b

    k1, k2, k3 = jax.random.split(key, 3)
    w1, b1 = linear(k1, 85, 128)
    w2, b2 = linear(k2, 128, 64)
    w3, b3 = linear(k3, 64, 2)
    return w1, b1, w2, b2, w3, b3


def reference_forward(x, params):
    """Reference with the same bf16 casting pattern as the kernel."""
    w1, b1, w2, b2, w3, b3 = params
    xb = x.astype(jnp.bfloat16)
    h1 = jnp.dot(xb, w1.astype(jnp.bfloat16), preferred_element_type=jnp.float32)
    h1 = jnp.maximum(h1 + b1, 0.0).astype(jnp.bfloat16)
    h2 = jnp.dot(h1, w2.astype(jnp.bfloat16), preferred_element_type=jnp.float32)
    h2 = jnp.maximum(h2 + b2, 0.0).astype(jnp.bfloat16)
    return jnp.dot(h2, w3.astype(jnp.bfloat16), preferred_element_type=jnp.float32) + b3


if __name__ == "__main__":
    key = jax.random.PRNGKey(0)
    kp, kx1, kx2, kx3 = jax.random.split(key, 4)
    params = init_params(kp)

    # 1) Small batch: single tile.
    B1 = 8
    x1 = jax.random.normal(kx1, (B1, 85), jnp.float32)
    out1 = jax.block_until_ready(net_forward(x1, params))
    ref1 = reference_forward(x1, params)
    assert out1.shape == (B1, 2)
    assert jnp.allclose(out1, ref1, atol=1e-2, rtol=1e-2), "mismatch (B=8)"

    # 2) Multi-tile grid with ragged tail (no wrapper pad; even-grid heuristic).
    B2 = 300
    x2 = jax.random.normal(kx2, (B2, 85), jnp.float32)
    out2 = jax.block_until_ready(net_forward(x2, params, block_rows=128))
    ref2 = reference_forward(x2, params)
    assert out2.shape == (B2, 2)
    assert jnp.allclose(out2, ref2, atol=1e-2, rtol=1e-2), "mismatch (B=300)"

    # 3) Single partial tile (B not a multiple of 8): masked tail writes.
    B3 = 257
    x3 = jax.random.normal(kx3, (B3, 85), jnp.float32)
    out3 = jax.block_until_ready(net_forward(x3, params))
    ref3 = reference_forward(x3, params)
    assert out3.shape == (B3, 2)
    assert jnp.allclose(out3, ref3, atol=1e-2, rtol=1e-2), "mismatch (B=257)"

    print("KERNEL_OK")
</pallas_src>

<mosaic_0001>
module attributes {stable_mosaic.version = 11 : i64} {
  func.func @mlp_kernel(%arg0: i32, %arg1: memref<8x85xf32, #tpu.memory_space<vmem>>, %arg2: memref<85x128xbf16, #tpu.memory_space<vmem>>, %arg3: memref<1x128xf32, #tpu.memory_space<vmem>>, %arg4: memref<128x64xbf16, #tpu.memory_space<vmem>>, %arg5: memref<1x64xf32, #tpu.memory_space<vmem>>, %arg6: memref<64x2xbf16, #tpu.memory_space<vmem>>, %arg7: memref<1x2xf32, #tpu.memory_space<vmem>>, %arg8: memref<8x2xf32, #tpu.memory_space<vmem>>) attributes {dimension_semantics = [#tpu.dimension_semantics<parallel>], iteration_bounds = array<i64: 1>, scalar_prefetch = 0 : i64, scratch_operands = 0 : i64, tpu.core_type = #tpu.core_type<tc>, window_params = [{transform_indices = @transform_0, window_bounds = array<i64: 8, 85>}, {pipeline_mode = #tpu.pipeline_mode<synchronous>, transform_indices = @transform_1, window_bounds = array<i64: 85, 128>}, {pipeline_mode = #tpu.pipeline_mode<synchronous>, transform_indices = @transform_2, window_bounds = array<i64: 1, 128>}, {pipeline_mode = #tpu.pipeline_mode<synchronous>, transform_indices = @transform_3, window_bounds = array<i64: 128, 64>}, {pipeline_mode = #tpu.pipeline_mode<synchronous>, transform_indices = @transform_4, window_bounds = array<i64: 1, 64>}, {pipeline_mode = #tpu.pipeline_mode<synchronous>, transform_indices = @transform_5, window_bounds = array<i64: 64, 2>}, {pipeline_mode = #tpu.pipeline_mode<synchronous>, transform_indices = @transform_6, window_bounds = array<i64: 1, 2>}, {transform_indices = @transform_7, window_bounds = array<i64: 8, 2>}]} {
    %c0 = arith.constant 0 : index
    %c0_0 = arith.constant 0 : index
    %0 = vector.load %arg1[%c0, %c0_0] : memref<8x85xf32, #tpu.memory_space<vmem>>, vector<8x85xf32>
    %1 = arith.truncf %0 : vector<8x85xf32> to vector<8x85xbf16>
    %c0_1 = arith.constant 0 : index
    %c0_2 = arith.constant 0 : index
    %2 = vector.load %arg2[%c0_1, %c0_2] : memref<85x128xbf16, #tpu.memory_space<vmem>>, vector<85x128xbf16>
    %cst = arith.constant dense<0.000000e+00> : vector<8x128xf32>
    %3 = tpu.matmul %1, %2, %cst {dimension_numbers = #tpu.dot_dimension_numbers<[1], [0], [0], [1], [0, 0, 1, 1], [], []>} : vector<8x85xbf16>, vector<85x128xbf16>, vector<8x128xf32> -> vector<8x128xf32>
    %c0_3 = arith.constant 0 : index
    %c0_4 = arith.constant 0 : index
    %4 = vector.load %arg3[%c0_3, %c0_4] : memref<1x128xf32, #tpu.memory_space<vmem>>, vector<1x128xf32>
    %5 = vector.broadcast %4 : vector<1x128xf32> to vector<8x128xf32>
    %6 = arith.addf %3, %5 : vector<8x128xf32>
    %cst_5 = arith.constant 0.000000e+00 : f32
    %7 = vector.broadcast %cst_5 : f32 to vector<8x128xf32>
    %8 = arith.maximumf %6, %7 : vector<8x128xf32>
    %9 = arith.truncf %8 : vector<8x128xf32> to vector<8x128xbf16>
    %c0_6 = arith.constant 0 : index
    %c0_7 = arith.constant 0 : index
    %10 = vector.load %arg4[%c0_6, %c0_7] : memref<128x64xbf16, #tpu.memory_space<vmem>>, vector<128x64xbf16>
    %cst_8 = arith.constant dense<0.000000e+00> : vector<8x64xf32>
    %11 = tpu.matmul %9, %10, %cst_8 {dimension_numbers = #tpu.dot_dimension_numbers<[1], [0], [0], [1], [0, 0, 1, 1], [], []>} : vector<8x128xbf16>, vector<128x64xbf16>, vector<8x64xf32> -> vector<8x64xf32>
    %c0_9 = arith.constant 0 : index
    %c0_10 = arith.constant 0 : index
    %12 = vector.load %arg5[%c0_9, %c0_10] : memref<1x64xf32, #tpu.memory_space<vmem>>, vector<1x64xf32>
    %13 = vector.broadcast %12 : vector<1x64xf32> to vector<8x64xf32>
    %14 = arith.addf %11, %13 : vector<8x64xf32>
    %cst_11 = arith.constant 0.000000e+00 : f32
    %15 = vector.broadcast %cst_11 : f32 to vector<8x64xf32>
    %16 = arith.maximumf %14, %15 : vector<8x64xf32>
    %17 = arith.truncf %16 : vector<8x64xf32> to vector<8x64xbf16>
    %c0_12 = arith.constant 0 : index
    %c0_13 = arith.constant 0 : index
    %18 = vector.load %arg6[%c0_12, %c0_13] : memref<64x2xbf16, #tpu.memory_space<vmem>>, vector<64x2xbf16>
    %cst_14 = arith.constant dense<0.000000e+00> : vector<8x2xf32>
    %19 = tpu.matmul %17, %18, %cst_14 {dimension_numbers = #tpu.dot_dimension_numbers<[1], [0], [0], [1], [0, 0, 1, 1], [], []>} : vector<8x64xbf16>, vector<64x2xbf16>, vector<8x2xf32> -> vector<8x2xf32>
    %c0_15 = arith.constant 0 : index
    %c0_16 = arith.constant 0 : index
    %20 = vector.load %arg7[%c0_15, %c0_16] : memref<1x2xf32, #tpu.memory_space<vmem>>, vector<1x2xf32>
    %21 = vector.broadcast %20 : vector<1x2xf32> to vector<8x2xf32>
    %22 = arith.addf %19, %21 : vector<8x2xf32>
    %c0_17 = arith.constant 0 : index
    %c0_18 = arith.constant 0 : index
    %23 = vector.load %arg8[%c0_17, %c0_18] : memref<8x2xf32, #tpu.memory_space<vmem>>, vector<8x2xf32>
    tpu.vector_store %arg8[%c0_17, %c0_18], %22 {strides = array<i32>} : memref<8x2xf32, #tpu.memory_space<vmem>>, vector<8x2xf32>,
    return
  }
  func.func @transform_0(%arg0: i32) -> (i32, i32) {
    %c0_i32 = arith.constant 0 : i32
    %c0_i32_0 = arith.constant 0 : i32
    return %arg0, %c0_i32 : i32, i32
  }
  func.func @transform_1(%arg0: i32) -> (i32, i32) {
    %c0_i32 = arith.constant 0 : i32
    %c0_i32_0 = arith.constant 0 : i32
    %c0_i32_1 = arith.constant 0 : i32
    return %c0_i32, %c0_i32_0 : i32, i32
  }
  func.func @transform_2(%arg0: i32) -> (i32, i32) {
    %c0_i32 = arith.constant 0 : i32
    %c0_i32_0 = arith.constant 0 : i32
    %c0_i32_1 = arith.constant 0 : i32
    return %c0_i32, %c0_i32_0 : i32, i32
  }
  func.func @transform_3(%arg0: i32) -> (i32, i32) {
    %c0_i32 = arith.constant 0 : i32
    %c0_i32_0 = arith.constant 0 : i32
    %c0_i32_1 = arith.constant 0 : i32
    return %c0_i32, %c0_i32_0 : i32, i32
  }
  func.func @transform_4(%arg0: i32) -> (i32, i32) {
    %c0_i32 = arith.constant 0 : i32
    %c0_i32_0 = arith.constant 0 : i32
    %c0_i32_1 = arith.constant 0 : i32
    return %c0_i32, %c0_i32_0 : i32, i32
  }
  func.func @transform_5(%arg0: i32) -> (i32, i32) {
    %c0_i32 = arith.constant 0 : i32
    %c0_i32_0 = arith.constant 0 : i32
    %c0_i32_1 = arith.constant 0 : i32
    return %c0_i32, %c0_i32_0 : i32, i32
  }
  func.func @transform_6(%arg0: i32) -> (i32, i32) {
    %c0_i32 = arith.constant 0 : i32
    %c0_i32_0 = arith.constant 0 : i32
    %c0_i32_1 = arith.constant 0 : i32
    return %c0_i32, %c0_i32_0 : i32, i32
  }
  func.func @transform_7(%arg0: i32) -> (i32, i32) {
    %c0_i32 = arith.constant 0 : i32
    %c0_i32_0 = arith.constant 0 : i32
    return %arg0, %c0_i32 : i32, i32
  }
}

</mosaic_0001>

<bundles_post_ra>
// kernel: tpu_custom_call.1
= control target key start
LH: loop header
LB: loop body
LE: loop exit
PB: predicated region body
PF: predicated region fallthrough
CT: control target
= control target key end

     0   :  { %vm84_vm0 = vcmask 1041408   ;;  %vm85_vm1 = vcmask 1042432   ;;  %v448_v0 = vmov 0.0   ;;  %v449_v2 = vmov 65535   ;;  %s584_s1 = inlined_call_operand.vmem [shape: bf16[85,128], index: 1, kind: input, shape index: {}]   ;;  %s585_s3 = inlined_call_operand.vmem [shape: bf16[128,64], index: 3, kind: input, shape index: {}]   ;;  %s586_s0 = inlined_call_operand.vmem [shape: f32[8,85], index: 0, kind: input, shape index: {}]   ;;  %s587_s5 = inlined_call_operand.vmem [shape: bf16[64,2], index: 5, kind: input, shape index: {}]   ;;  %s588_s2 = inlined_call_operand.vmem [shape: f32[1,128], index: 2, kind: input, shape index: {}]   ;;  %s589_s4 = inlined_call_operand.vmem [shape: f32[1,64], index: 4, kind: input, shape index: {}]   ;;  %s590_s6 = inlined_call_operand.vmem [shape: f32[1,2], index: 6, kind: input, shape index: {}]   ;;  %s591_s7 = inlined_call_operand.vmem [shape: f32[8,2], index: 7, kind: output, shape index: {}]  }
   0x1   :  { %379 = vmatprep.subr.bf16.mxu0 %v448_v0  ;;  %v430_v1 = vld [vmem:[%s584_s1 + $0x28] ss:$0 sps:$4 sm:$0x77]   ;;  %v86_v3 = vsel %vm84_vm0, 4294967295, %v449_v2  ;;  %395 = vmatprep.subr.bf16.mxu1 %v448_v0  ;;  %vm450_vm2 = vmmov 0   ;;  %v431_v6 = vld [vmem:[%s584_s1 + $0x20] sm:$0xff]  }
   0x2   :  { %v87_v4 = vsel %vm85_vm1, %v86_v3, 0  ;;  %391 = vmatprep.mubr.msk.bf16.mxu0 %vm450_vm2, %v448_v0  ;;  %411 = vmatprep.mubr.msk.bf16.mxu1 %vm450_vm2, %v448_v0  ;;  %v436_v7 = vld [vmem:[%s585_s3 + $0x38] sm:$0xff]   ;;  %v437_v9 = vld [vmem:[%s585_s3 + $0x30] sm:$0xff]   ;;  %v438_v11 = vld [vmem:[%s585_s3 + $0x28] sm:$0xff]   ;;  %vm80_vm3 = vcmask 695296   ;;  %vm285_vm4 = vcmask 523264  }
   0x3   :  { %v89_v5 = vand.u32 %v430_v1, %v87_v4  ;;  %v432_v8 = vld [vmem:[%s584_s1 + $0x18] sm:$0xff]   ;;  %396 = vmatpush3.bf16.msra.mxu1 %v436_v7  ;;  %v433_v10 = vld [vmem:[%s584_s1 + $0x10] sm:$0xff]   ;;  %v434_v12 = vld [vmem:[%s584_s1 + $0x8] sm:$0xff]   ;;  %vm329_vm5 = vcmask 15360  }
   0x4   :  { %397 = vmatprep.subr.bf16.mxu1 %v448_v0  ;;  %v439_v13 = vld [vmem:[%s585_s3 + $0x20] sm:$0xff]   ;;  %v440_v16 = vld [vmem:[%s585_s3 + $0x18] sm:$0xff]   ;;  %v441_v18 = vld [vmem:[%s585_s3 + $0x10] sm:$0xff]  }
   0x5   :  { %380 = vmatpush3.bf16.msra.mxu0 %v89_v5  ;;  %v435_v14 = vld [vmem:[%s584_s1] sm:$0xff]   ;;  %v442_v19 = vld [vmem:[%s585_s3 + $0x8] sm:$0xff]   ;;  %v444_v21 = vld [vmem:[%s587_s5 + $0x18] sm:$0xff]  }
   0x6   :  { %381 = vmatprep.subr.bf16.mxu0 %v448_v0  ;;  %v27_v15 = vld [vmem:[%s586_s0] sm:$0xff]  ;;  %v445_v22 = vld [vmem:[%s587_s5 + $0x10] sm:$0xff]   ;;  %v446_v31 = vld [vmem:[%s587_s5 + $0x8] sm:$0xff]  }
   0x7   :  { %398 = vmatpush3.bf16.msra.mxu1 %v437_v9  ;;  %v28_v17 = vpack.c.bf16 %v27_v15, %v27_v15  ;;  %v443_v20 = vld [vmem:[%s585_s3] sm:$0xff]  }
   0x8   :  { %399 = vmatprep.subr.bf16.mxu1 %v448_v0  ;;  %v335_v23 = vld [vmem:[%s588_s2] ss:$0 sm:$0xff] }
   0x9   :  { %382 = vmatpush3.bf16.msra.mxu0 %v431_v6  ;;  %v447_v32 = vld [vmem:[%s587_s5] sm:$0xff]  }
   0xa   :  { %383 = vmatprep.subr.bf16.mxu0 %v448_v0  ;;  %v343_v33 = vld [vmem:[%s589_s4] ss:$0 sm:$0xff] }
   0xb   :  { %400 = vmatpush3.bf16.msra.mxu1 %v438_v11  ;;  %v352_v41 = vld [vmem:[%s590_s6] ss:$0 sm:$0xff] }
   0xc   :  { %401 = vmatprep.subr.bf16.mxu1 %v448_v0 }
   0xd   :  { %384 = vmatpush3.bf16.msra.mxu0 %v432_v8 }
   0xe   :  { %385 = vmatprep.subr.bf16.mxu0 %v448_v0 }
   0xf   :  { %402 = vmatpush3.bf16.msra.mxu1 %v439_v13 }
  0x10   :  { %403 = vmatprep.subr.bf16.mxu1 %v448_v0 }
  0x11   :  { %386 = vmatpush3.bf16.msra.mxu0 %v433_v10 }
  0x12   :  { %387 = vmatprep.subr.bf16.mxu0 %v448_v0 }
  0x13   :  { %404 = vmatpush3.bf16.msra.mxu1 %v440_v16 }
  0x14   :  { %405 = vmatprep.subr.bf16.mxu1 %v448_v0 }
  0x15   :  { %388 = vmatpush3.bf16.msra.mxu0 %v434_v12 }
  0x16   :  { %389 = vmatprep.subr.bf16.mxu0 %v448_v0 }
  0x17   :  { %406 = vmatpush3.bf16.msra.mxu1 %v441_v18 }
  0x18   :  { %407 = vmatprep.subr.bf16.mxu1 %v448_v0 }
  0x19   :  { %390 = vmatpush3.bf16.msra.mxu0 %v435_v14 }
  0x1a   :  { %415 = vmatprep.subr.bf16.mxu0 %v448_v0 }
  0x1b   :  { %408 = vmatpush3.bf16.msra.mxu1 %v442_v19 }
  0x1c   :  { %392 = vmatmul.mubr.msk.bf16.vlgmr.msra.gmra.mxu0 %vm80_vm3, %v28_v17  ;;  %409 = vmatprep.subr.bf16.mxu1 %v448_v0 }
  0x1d   :  { %423 = vmatprep.mubr.msk.bf16.mxu0 %vm450_vm2, %v448_v0  ;;  %416 = vmatpush3.bf16.msra.mxu0 %v444_v21 }
  0x1e   :  { %417 = vmatprep.subr.bf16.mxu0 %v448_v0 }
  0x1f   :  { %410 = vmatpush3.bf16.msra.mxu1 %v443_v20 }
  0x21   :  { %418 = vmatpush3.bf16.msra.mxu0 %v445_v22 }
  0x22   :  { %419 = vmatprep.subr.bf16.mxu0 %v448_v0 }
  0x25   :  { %420 = vmatpush3.bf16.msra.mxu0 %v446_v31 }
  0x26   :  { %421 = vmatprep.subr.bf16.mxu0 %v448_v0 }
  0x29   :  { %422 = vmatpush3.bf16.msra.mxu0 %v447_v32 }
  0xdc   :  { %v125_v24 = vpop.f32.mrf.mxu0 }
  0xdd   :  { %v126_v25 = vadd.f32 %v335_v23, %v125_v24 }
  0xde   :  { %v393_v26 = vpop.f32.mrf.mxu0 }
  0xdf   :  { %v131_v27 = vmax.f32 %v126_v25, 0.0 }
  0xe0   :  { %v128_v28 = vpop.f32.mrf.mxu0 }
  0xe1   :  { %v132_v29 = vpack.c.bf16 %v131_v27, %v131_v27 }
  0xe2   :  { %v394_v30 = vpop.f32.mrf.mxu0 }
  0xe3   :  { %412 = vmatmul.mubr.bf16.vlgmr.msra.gmra.mxu1 %v132_v29 }
 0x1a3   :  { %v238_v34 = vpop.f32.mrf.mxu1 }
 0x1a4   :  { %v239_v35 = vadd.f32 %v343_v33, %v238_v34 }
 0x1a5   :  { %v413_v36 = vpop.f32.mrf.mxu1 }
 0x1a6   :  { %v244_v37 = vmax.f32 %v239_v35, 0.0 }
 0x1a7   :  { %v241_v38 = vpop.f32.mrf.mxu1 }
 0x1a8   :  { %v245_v39 = vpack.c.bf16 %v244_v37, %v244_v37 }
 0x1a9   :  { %v414_v40 = vpop.f32.mrf.mxu1 }
 0x1aa   :  { %424 = vmatmul.mubr.msk.bf16.vlgmr.msra.gmra.mxu0 %vm285_vm4, %v245_v39 }
 0x26a   :  { %v323_v42 = vpop.f32.mrf.mxu0 }
 0x26b   :  { %v324_v43 = vadd.f32 %v352_v41, %v323_v42 }
 0x26c   :  { %v425_v44 = vpop.f32.mrf.mxu0 }
 0x26d   :  { %330 = vst.msk [vmem:[%s591_s7] sm:$0xff] %vm329_vm5, %v324_v43 }
 0x26e   :  { %v326_v45 = vpop.f32.mrf.mxu0 }
 0x270   :  { %v426_v46 = vpop.f32.mrf.mxu0 }

</bundles_post_ra>
